<compile_context>
chip_gen: v7x
topology: tpu7x:2x2x1
jax: 0.10.0
libtpu: 0.0.40
codegen_flags: <defaults>
</compile_context>

<pallas_src>
import functools

import jax
import jax.numpy as jnp
import numpy as np
from jax.experimental import pallas as pl
from jax.experimental.pallas import tpu as pltpu

KSIZE = 7
LANE = 128

# Deterministic blur weights (same as the PyTorch buffer in __init__).
_b = np.array([1.0, 6.0, 15.0, 20.0, 15.0, 6.0, 1.0], dtype=np.float64)
_BLUR = _b[:, None] * _b[None, :]
_BLUR = (_BLUR / _BLUR.sum()).astype(np.float32)   # (7, 7), sums to 1
# 1-D separable factor: _B1[i] * _B1[j] == _BLUR[i, j] exactly (power-of-two denominators).
_B1 = (_b / _b.sum()).astype(np.float32)           # (7,)


def _blur_sep_kernel(x_ref, o_ref, *, h_out, w_out, stride):
    """Separable 7x7 binomial blur for one (batch, channel-block).

    x_ref: (1, Hp, Wp, Cb)   spatially padded input, channels-last (Cb on lanes)
    o_ref: (1, h_out, w_out, Cb)
    """
    x = x_ref[0]  # (Hp, Wp, Cb), native dtype

    # Vertical pass: 7 taps; output-row selection (and stride) on the leading
    # axis -> cheap offset loads.  Accumulate in f32.
    tmp = None
    for i in range(KSIZE):
        h_end = i + stride * (h_out - 1) + 1
        rows = x[i:h_end:stride, :, :].astype(jnp.float32)   # (h_out, Wp, Cb)
        term = rows * jnp.float32(_B1[i])
        tmp = term if tmp is None else tmp + term

    # Horizontal pass: 7 taps; shifts/stride on the sublane axis (never lanes).
    acc = None
    for j in range(KSIZE):
        w_end = j + stride * (w_out - 1) + 1
        cols = tmp[:, j:w_end:stride, :]                     # (h_out, w_out, Cb)
        term = cols * jnp.float32(_B1[j])
        acc = term if acc is None else acc + term

    o_ref[0] = acc.astype(o_ref.dtype)


def downsample2d(x, nchannels, stride=1, padding=0, *, vmem_budget_bytes=16 << 20):
    """Pallas equivalent of Downsample2d.forward. x: (N, C, H, W) -> (N, C, Ho, Wo)."""
    assert x.shape[1] == nchannels
    n, c, _, _ = x.shape

    # --- glue: channels-last re-layout + spatial padding (fused by XLA into the
    # transpose copy) ---
    xt = jnp.transpose(x, (0, 2, 3, 1))                      # (N, H, W, C)
    if padding == "reflect":
        xt = jnp.pad(xt, ((0, 0), (3, 3), (3, 3), (0, 0)), mode="reflect")
    elif padding != 0:
        p = int(padding)
        xt = jnp.pad(xt, ((0, 0), (p, p), (p, p), (0, 0)))
    # Pad channels up to a multiple of 128 so blocks / stores are lane-dense.
    c_pad = ((c + LANE - 1) // LANE) * LANE
    if c_pad != c:
        xt = jnp.pad(xt, ((0, 0), (0, 0), (0, 0), (0, c_pad - c)))

    _, hp, wp, _ = xt.shape
    h_out = (hp - KSIZE) // stride + 1
    w_out = (wp - KSIZE) // stride + 1
    assert h_out > 0 and w_out > 0

    # --- channel-block size: bound VMEM per grid step (double-buffered I/O
    # blocks + f32 intermediates), keeping it a multiple of 128 lanes ---
    in_itemsize = xt.dtype.itemsize
    out_itemsize = x.dtype.itemsize
    groups = c_pad // LANE
    bytes_per_group = LANE * (
        2 * hp * wp * in_itemsize              # double-buffered input block
        + 2 * h_out * w_out * out_itemsize     # double-buffered output block
        + (h_out * wp + h_out * w_out) * 4     # f32 intermediates
    )
    k = max(1, min(groups, vmem_budget_bytes // max(bytes_per_group, 1)))
    while groups % k:
        k -= 1
    c_blk = k * LANE
    n_cblk = c_pad // c_blk

    kernel = functools.partial(
        _blur_sep_kernel, h_out=h_out, w_out=w_out, stride=stride
    )

    flops = 2 * n * c_pad * KSIZE * (h_out * wp + h_out * w_out)
    bytes_accessed = int(xt.size) * in_itemsize + n * c_pad * h_out * w_out * out_itemsize

    out = pl.pallas_call(
        kernel,
        out_shape=jax.ShapeDtypeStruct((n, h_out, w_out, c_pad), x.dtype),
        grid_spec=pltpu.PrefetchScalarGridSpec(
            num_scalar_prefetch=0,
            grid=(n, n_cblk),
            in_specs=[
                pl.BlockSpec((1, hp, wp, c_blk), lambda ni, ci: (ni, 0, 0, ci)),
            ],
            out_specs=pl.BlockSpec(
                (1, h_out, w_out, c_blk), lambda ni, ci: (ni, 0, 0, ci)
            ),
        ),
        compiler_params=pltpu.CompilerParams(
            dimension_semantics=("parallel", "parallel"),
            vmem_limit_bytes=32 * 1024 * 1024,
        ),
        cost_estimate=pl.CostEstimate(
            flops=flops, transcendentals=0, bytes_accessed=bytes_accessed
        ),
    )(xt)

    # Drop channel padding, back to NCHW.
    return jnp.transpose(out[..., :c], (0, 3, 1, 2))


def _reference(x, nchannels, stride=1, padding=0):
    """Pure-JAX reference (mirrors torch F.conv2d with groups=nchannels)."""
    w = jnp.broadcast_to(
        jnp.asarray(_BLUR)[None, None], (nchannels, 1, KSIZE, KSIZE)
    )
    if padding == "reflect":
        x = jnp.pad(x, ((0, 0), (0, 0), (3, 3), (3, 3)), mode="reflect")
        pad = "VALID"
    elif padding == 0:
        pad = "VALID"
    else:
        p = int(padding)
        pad = ((p, p), (p, p))
    return jax.lax.conv_general_dilated(
        x, w,
        window_strides=(stride, stride),
        padding=pad,
        feature_group_count=nchannels,
        dimension_numbers=("NCHW", "OIHW", "NCHW"),
    )


if __name__ == "__main__":
    key = jax.random.PRNGKey(0)
    N, C, H, W = 2, 4, 16, 16
    x = jax.random.normal(key, (N, C, H, W), dtype=jnp.float32)

    # Config 1: module defaults (stride=1, padding=0) -> (2, 4, 10, 10)
    out1 = downsample2d(x, nchannels=C, stride=1, padding=0)
    jax.block_until_ready(out1)
    ref1 = _reference(x, nchannels=C, stride=1, padding=0)
    np.testing.assert_allclose(np.asarray(out1), np.asarray(ref1),
                               rtol=1e-5, atol=1e-5)

    # Config 2: reflect padding + stride 2 -> (2, 4, 8, 8)
    out2 = downsample2d(x, nchannels=C, stride=2, padding="reflect")
    jax.block_until_ready(out2)
    ref2 = _reference(x, nchannels=C, stride=2, padding="reflect")
    np.testing.assert_allclose(np.asarray(out2), np.asarray(ref2),
                               rtol=1e-5, atol=1e-5)

    print("KERNEL_OK")
</pallas_src>

<mosaic_0001>
module attributes {stable_mosaic.version = 11 : i64} {
  func.func @_blur_sep_kernel(%arg0: i32, %arg1: i32, %arg2: memref<1x16x16x128xf32, #tpu.memory_space<vmem>>, %arg3: memref<1x10x10x128xf32, #tpu.memory_space<vmem>>) attributes {dimension_semantics = [#tpu.dimension_semantics<parallel>, #tpu.dimension_semantics<parallel>], iteration_bounds = array<i64: 2, 1>, scalar_prefetch = 0 : i64, scratch_operands = 0 : i64, tpu.core_type = #tpu.core_type<tc>, window_params = [{transform_indices = @transform_0, window_bounds = array<i64: 1, 16, 16, 128>}, {transform_indices = @transform_1, window_bounds = array<i64: 1, 10, 10, 128>}]} {
    %c0 = arith.constant 0 : index
    %c0_0 = arith.constant 0 : index
    %c0_1 = arith.constant 0 : index
    %c0_2 = arith.constant 0 : index
    %0 = vector.load %arg2[%c0, %c0_0, %c0_1, %c0_2] : memref<1x16x16x128xf32, #tpu.memory_space<vmem>>, vector<1x16x16x128xf32>
    %1 = vector.shape_cast %0 : vector<1x16x16x128xf32> to vector<16x16x128xf32>
    %2 = vector.extract_strided_slice %1 {offsets = [0, 0, 0], sizes = [10, 16, 128], strides = [1, 1, 1]} : vector<16x16x128xf32> to vector<10x16x128xf32>
    %cst = arith.constant 1.562500e-02 : f32
    %3 = vector.broadcast %cst : f32 to vector<10x16x128xf32>
    %4 = arith.mulf %2, %3 : vector<10x16x128xf32>
    %5 = vector.extract_strided_slice %1 {offsets = [1, 0, 0], sizes = [10, 16, 128], strides = [1, 1, 1]} : vector<16x16x128xf32> to vector<10x16x128xf32>
    %cst_3 = arith.constant 9.375000e-02 : f32
    %6 = vector.broadcast %cst_3 : f32 to vector<10x16x128xf32>
    %7 = arith.mulf %5, %6 : vector<10x16x128xf32>
    %8 = arith.addf %4, %7 : vector<10x16x128xf32>
    %9 = vector.extract_strided_slice %1 {offsets = [2, 0, 0], sizes = [10, 16, 128], strides = [1, 1, 1]} : vector<16x16x128xf32> to vector<10x16x128xf32>
    %cst_4 = arith.constant 2.343750e-01 : f32
    %10 = vector.broadcast %cst_4 : f32 to vector<10x16x128xf32>
    %11 = arith.mulf %9, %10 : vector<10x16x128xf32>
    %12 = arith.addf %8, %11 : vector<10x16x128xf32>
    %13 = vector.extract_strided_slice %1 {offsets = [3, 0, 0], sizes = [10, 16, 128], strides = [1, 1, 1]} : vector<16x16x128xf32> to vector<10x16x128xf32>
    %cst_5 = arith.constant 3.125000e-01 : f32
    %14 = vector.broadcast %cst_5 : f32 to vector<10x16x128xf32>
    %15 = arith.mulf %13, %14 : vector<10x16x128xf32>
    %16 = arith.addf %12, %15 : vector<10x16x128xf32>
    %17 = vector.extract_strided_slice %1 {offsets = [4, 0, 0], sizes = [10, 16, 128], strides = [1, 1, 1]} : vector<16x16x128xf32> to vector<10x16x128xf32>
    %cst_6 = arith.constant 2.343750e-01 : f32
    %18 = vector.broadcast %cst_6 : f32 to vector<10x16x128xf32>
    %19 = arith.mulf %17, %18 : vector<10x16x128xf32>
    %20 = arith.addf %16, %19 : vector<10x16x128xf32>
    %21 = vector.extract_strided_slice %1 {offsets = [5, 0, 0], sizes = [10, 16, 128], strides = [1, 1, 1]} : vector<16x16x128xf32> to vector<10x16x128xf32>
    %cst_7 = arith.constant 9.375000e-02 : f32
    %22 = vector.broadcast %cst_7 : f32 to vector<10x16x128xf32>
    %23 = arith.mulf %21, %22 : vector<10x16x128xf32>
    %24 = arith.addf %20, %23 : vector<10x16x128xf32>
    %25 = vector.extract_strided_slice %1 {offsets = [6, 0, 0], sizes = [10, 16, 128], strides = [1, 1, 1]} : vector<16x16x128xf32> to vector<10x16x128xf32>
    %cst_8 = arith.constant 1.562500e-02 : f32
    %26 = vector.broadcast %cst_8 : f32 to vector<10x16x128xf32>
    %27 = arith.mulf %25, %26 : vector<10x16x128xf32>
    %28 = arith.addf %24, %27 : vector<10x16x128xf32>
    %29 = vector.extract_strided_slice %28 {offsets = [0, 0, 0], sizes = [10, 10, 128], strides = [1, 1, 1]} : vector<10x16x128xf32> to vector<10x10x128xf32>
    %cst_9 = arith.constant 1.562500e-02 : f32
    %30 = vector.broadcast %cst_9 : f32 to vector<10x10x128xf32>
    %31 = arith.mulf %29, %30 : vector<10x10x128xf32>
    %32 = vector.extract_strided_slice %28 {offsets = [0, 1, 0], sizes = [10, 10, 128], strides = [1, 1, 1]} : vector<10x16x128xf32> to vector<10x10x128xf32>
    %cst_10 = arith.constant 9.375000e-02 : f32
    %33 = vector.broadcast %cst_10 : f32 to vector<10x10x128xf32>
    %34 = arith.mulf %32, %33 : vector<10x10x128xf32>
    %35 = arith.addf %31, %34 : vector<10x10x128xf32>
    %36 = vector.extract_strided_slice %28 {offsets = [0, 2, 0], sizes = [10, 10, 128], strides = [1, 1, 1]} : vector<10x16x128xf32> to vector<10x10x128xf32>
    %cst_11 = arith.constant 2.343750e-01 : f32
    %37 = vector.broadcast %cst_11 : f32 to vector<10x10x128xf32>
    %38 = arith.mulf %36, %37 : vector<10x10x128xf32>
    %39 = arith.addf %35, %38 : vector<10x10x128xf32>
    %40 = vector.extract_strided_slice %28 {offsets = [0, 3, 0], sizes = [10, 10, 128], strides = [1, 1, 1]} : vector<10x16x128xf32> to vector<10x10x128xf32>
    %cst_12 = arith.constant 3.125000e-01 : f32
    %41 = vector.broadcast %cst_12 : f32 to vector<10x10x128xf32>
    %42 = arith.mulf %40, %41 : vector<10x10x128xf32>
    %43 = arith.addf %39, %42 : vector<10x10x128xf32>
    %44 = vector.extract_strided_slice %28 {offsets = [0, 4, 0], sizes = [10, 10, 128], strides = [1, 1, 1]} : vector<10x16x128xf32> to vector<10x10x128xf32>
    %cst_13 = arith.constant 2.343750e-01 : f32
    %45 = vector.broadcast %cst_13 : f32 to vector<10x10x128xf32>
    %46 = arith.mulf %44, %45 : vector<10x10x128xf32>
    %47 = arith.addf %43, %46 : vector<10x10x128xf32>
    %48 = vector.extract_strided_slice %28 {offsets = [0, 5, 0], sizes = [10, 10, 128], strides = [1, 1, 1]} : vector<10x16x128xf32> to vector<10x10x128xf32>
    %cst_14 = arith.constant 9.375000e-02 : f32
    %49 = vector.broadcast %cst_14 : f32 to vector<10x10x128xf32>
    %50 = arith.mulf %48, %49 : vector<10x10x128xf32>
    %51 = arith.addf %47, %50 : vector<10x10x128xf32>
    %52 = vector.extract_strided_slice %28 {offsets = [0, 6, 0], sizes = [10, 10, 128], strides = [1, 1, 1]} : vector<10x16x128xf32> to vector<10x10x128xf32>
    %cst_15 = arith.constant 1.562500e-02 : f32
    %53 = vector.broadcast %cst_15 : f32 to vector<10x10x128xf32>
    %54 = arith.mulf %52, %53 : vector<10x10x128xf32>
    %55 = arith.addf %51, %54 : vector<10x10x128xf32>
    %c0_16 = arith.constant 0 : index
    %c0_17 = arith.constant 0 : index
    %c0_18 = arith.constant 0 : index
    %c0_19 = arith.constant 0 : index
    %56 = vector.load %arg3[%c0_16, %c0_17, %c0_18, %c0_19] : memref<1x10x10x128xf32, #tpu.memory_space<vmem>>, vector<1x10x10x128xf32>
    %57 = vector.shape_cast %56 : vector<1x10x10x128xf32> to vector<10x10x128xf32>
    %58 = vector.shape_cast %55 : vector<10x10x128xf32> to vector<1x10x10x128xf32>
    tpu.vector_store %arg3[%c0_16, %c0_17, %c0_18, %c0_19], %58 {strides = array<i32>} : memref<1x10x10x128xf32, #tpu.memory_space<vmem>>, vector<1x10x10x128xf32>,
    return
  }
  func.func @transform_0(%arg0: i32, %arg1: i32) -> (i32, i32, i32, i32) {
    %c0_i32 = arith.constant 0 : i32
    %c0_i32_0 = arith.constant 0 : i32
    %c0_i32_1 = arith.constant 0 : i32
    return %arg0, %c0_i32, %c0_i32_0, %arg1 : i32, i32, i32, i32
  }
  func.func @transform_1(%arg0: i32, %arg1: i32) -> (i32, i32, i32, i32) {
    %c0_i32 = arith.constant 0 : i32
    %c0_i32_0 = arith.constant 0 : i32
    %c0_i32_1 = arith.constant 0 : i32
    return %arg0, %c0_i32, %c0_i32_0, %arg1 : i32, i32, i32, i32
  }
}

</mosaic_0001>

<bundles_post_ra>
// kernel: tpu_custom_call.1
= control target key start
LH: loop header
LB: loop body
LE: loop exit
PB: predicated region body
PF: predicated region fallthrough
CT: control target
= control target key end

     0   :  { %6 = vsyncpa [#allocation3], 0  ;;  %s1833_s0 = inlined_call_operand.hbm [shape: f32[2,16,16,128], index: 0, kind: input, shape index: {}]   ;;  %s1834_s1 = inlined_call_operand.vmem [shape: f32[2,10,10,128], index: 1, kind: output, shape index: {}]  }
   0x1   :  { %8 = vsyncpa [#allocation3 + $0x1], 0  ;;  %s1279_s6 = smov 0   ;;  %s1281_s7 = smov 0  }
   0x2   :  { %s1283_s8 = smov 0   ;;  %s1285_s9 = smov 0  }
   0x3   :  { %s1287_s10 = smov 0   ;;  %s1289_s11 = smov 0  }
   0x4 LB: > { %s1113_s12 = sadd.s32 4294967295, %s1264_s11   ;;  %s26_s13 = sadd.s32 1, %s1260_s10  ;;  %s1264_s11 = sphi %s1289_s11, %s14_s11   ;;  %s1260_s10 = sphi %s1287_s10, %s1866_s10   ;;  %s1256_s9 = sphi %s1285_s9, %s1865_s9   ;;  %s1252_s8 = sphi %s1283_s8, %s1864_s8   ;;  %s1248_s7 = sphi %s1281_s7, %s1863_s7   ;;  %s1244_s6 = sphi %s1279_s6, %s1862_s6  }
   0x5   : > { %p28_p0 = scmp.ge.s32.totalorder %s26_s13, 2  ;;  %s35_s14 = sadd.s32 1, %s1252_s8 }
   0x6   : > { %p42_p1 = scmp.ne.s32.totalorder %s1252_s8, %s1248_s7  ;;  %p43_p2 = scmp.eq.s32.totalorder %s1264_s11, 0 }
   0x7   : > { %s1868_s13 = smov (%p28_p0, %s26_s13), 0  ;;  %p48_p4 = scmp.ne.s32.totalorder %s1248_s7, %s1244_s6 }
   0x8   : > { %p1315_p3 = por %p43_p2, %p42_p1  ;;  %s30_s16 = ssub.s32 %s1260_s10, %s1868_s13 }
   0x9   : > { %p49_p5 = scmp.eq.s32.totalorder %s1113_s12, 0  ;;  %p33_p6 = scmp.eq.s32.totalorder %s30_s16, 0 }
   0xa   : > { %p1133_p8 = scmp.lt.s32.totalorder %s1264_s11, 2  ;;  %s100_s19 = sand.u32 1, %s1252_s8  }
   0xb   : > { %p1322_p7 = por %p49_p5, %p48_p4  ;;  %s1125_s20 = sshll.u32 %s1260_s10, 12 }
   0xc   : > { %s1328_s18 = scalar_select %p33_p6, %s1252_s8, %s35_s14  }
   0xd   : > { %s1117_s21 = sshll.u32 %s100_s19, 8  ;;  %s1335_s24 = scalar_lea.hbm %s1833_s0, %s1125_s20 }
   0xe   : > { %s104_s25 = scalar_lea.vmem [#allocation2], %s1117_s21  ;;  %p1339_p9 = pnand %p1133_p8, %p1315_p3 }
   0xf   : > { %s112_s26 = sshll.u32 %s104_s25, 4  ;;  %s1345_s28 = scalar_lea.sflag [#allocation3], %s100_s19  ;;  %s1343_s26 = int_to_ptr.vmem [resolvable:$true] %s112_s26 }
  0x10   : > { %s1184_s29 = scalar_lea.hbm %s1335_s24, 4096  ;;  %p1186_p11 = pneg %p1339_p9 }
  0x11   : > { %p1185_p10 = scmp.ne.s32.totalorder %s1335_s24, %s1184_s29  ;;  %s1189_s3 = scalar_lea.hbm %s1833_s0, 8192 }
  0x12   : > { %p1190_p0 = scmp.lt.u32.totalorder %s1335_s24, %s1833_s0  ;;  %p1191_p1 = scmp.lt.u32.totalorder %s1189_s3, %s1184_s29 }
  0x13   : > { %p1187_p12 = pnand %p1186_p11, %p1185_p10  ;;  %p1193_p3 = scmp.lt.u32.totalorder %s1184_s29, %s1335_s24 }
  0x14   : > { %p1192_p2 = por %p1191_p1, %p1190_p0 }
  0x15   : > { %p1188_p13 = pneg %p1187_p12 }
  0x16   : > { %p1194_p4 = por %p1193_p3, %p1192_p2 }
  0x18   : > { %p1195_p5 = pnand %p1194_p4, %p1188_p13 }
  0x1a   : > { %1198 = shalt.err (!%p1195_p5)
}
  0x1b   : > { %s1199_s6 = scalar_lea.vmem %s1343_s26, 4096  ;;  %s1266_s12 = smov [#allocation2]  }
  0x1c   : > { %p1200_p6 = scmp.ne.s32.totalorder %s1343_s26, %s1199_s6  ;;  %s1204_s14 = sshll.u32 %s1266_s12, 4  ;;  %s1205_s14 = int_to_ptr.vmem [resolvable:$false] %s1204_s14 }
  0x1d   : > { %s1206_s15 = scalar_lea.vmem %s1205_s14, 8192  ;;  %p1207_p12 = scmp.lt.s32.totalorder %s1343_s26, %s1205_s14 }
  0x1e   : > { %p1202_p8 = pnand %p1200_p6, %p1186_p11  ;;  %p1208_p0 = scmp.lt.s32.totalorder %s1206_s15, %s1199_s6 }
  0x20   : > { %p1203_p10 = pneg %p1202_p8  ;;  %p1209_p1 = por %p1208_p0, %p1207_p12 }
  0x22   : > { %p1210_p2 = pnand %p1209_p1, %p1203_p10 }
  0x24   : > { %1213 = shalt.err (!%p1210_p2)
}
  0x25   : > { %s1267_s16 = smov 128   ;;  %s1268_s19 = smov 8  }
  0x26   : > { %1132 = dma.hbm_to_vmem [thread:$0]  (!%p1339_p9), %s1335_s24, 4096, %s1343_s26, %s1345_s28, %s1267_s16, %s1267_s16, %s1268_s19  }
  0x27   : > { %p1120_p11 = scmp.ge.s32.totalorder %s1264_s11, 1  ;;  %p120_p13 = scmp.lt.s32.totalorder %s1264_s11, 3 }
  0x29   : > { %p121_p3 = pnand %p1120_p11, %p120_p13 }
  0x2b   : > { %124 = sbr.rel (%p121_p3) target bundleno = 218 (0xda), region = 24 }
  0x32   : > { %s126_s20 = sand.u32 1, %s1248_s7  }
  0x33   : > { %s1121_s21 = sshll.u32 %s126_s20, 8  ;;  %s127_s22 = scalar_lea.sflag [#allocation3], %s126_s20 }
  0x34   : > { %s1376_s23 = scalar_lea.vmem [#allocation2], %s1121_s21 }
  0x35   : > { %1239 = dma.done.wait (%p1322_p7), %s127_s22, 4096  }
  0x36   : > { %1241 = vsyncadd (%p1322_p7), %s127_s22, 4294963200  ;;  %v160_v0 = vld [vmem:[%s1376_s23] sm:$0xff]  ;;  %v161_v1 = vld [vmem:[%s1376_s23 + $0x8] sm:$0xff]  ;;  %vm476_vm0 = vcmask 1046528   ;;  %vm587_vm1 = vcmask 1045504   ;;  %vm769_vm2 = vcmask 1043456  }
  0x37   : > { %v162_v2 = vld [vmem:[%s1376_s23 + $0x10] sm:$0xff]  ;;  %v163_v3 = vld [vmem:[%s1376_s23 + $0x18] sm:$0xff]  ;;  %v1387_v4 = vld [vmem:[%s1376_s23 + $0x20] sm:$0xff]  ;;  %v192_v6 = vmul.f32 0.015625, %v160_v0  ;;  %v193_v7 = vmul.f32 0.015625, %v161_v1  ;;  %vm698_vm3 = vcmask 1044480  }
  0x38   : > { %v1390_v5 = vld [vmem:[%s1376_s23 + $0x28] sm:$0xff]  ;;  %v212_v8 = vmul.f32 0.09375, %v162_v2  ;;  %v1393_v9 = vld [vmem:[%s1376_s23 + $0x30] sm:$0xff]  ;;  %v1396_v10 = vld [vmem:[%s1376_s23 + $0x40] sm:$0xff]  ;;  %v213_v11 = vmul.f32 0.09375, %v163_v3  ;;  %v252_v12 = vmul.f32 0.234375, %v1387_v4 }
  0x39   : > { %v253_v13 = vmul.f32 0.234375, %v1390_v5  ;;  %v1401_v14 = vld [vmem:[%s1376_s23 + $0x48] sm:$0xff]  ;;  %v1404_v15 = vld [vmem:[%s1376_s23 + $0x50] sm:$0xff]  ;;  %v1407_v16 = vld [vmem:[%s1376_s23 + $0x58] sm:$0xff]  ;;  %v200_v17 = vmul.f32 0.015625, %v1396_v10  ;;  %v1411_v19 = vmul.f32 0.234375, %v1396_v10 }
  0x3a   : > { %v232_v18 = vadd.f32 %v212_v8, %v192_v6  ;;  %v292_v20 = vmul.f32 0.3125, %v1393_v9  ;;  %v1415_v21 = vld [vmem:[%s1376_s23 + $0x60] sm:$0xff]  ;;  %v1418_v22 = vld [vmem:[%s1376_s23 + $0x68] sm:$0xff]  ;;  %v1421_v23 = vld [vmem:[%s1376_s23 + $0x70] sm:$0xff]  ;;  %v201_v24 = vmul.f32 0.015625, %v1401_v14  ;;  %v220_v25 = vmul.f32 0.09375, %v1404_v15 }
  0x3b   : > { %v221_v26 = vmul.f32 0.09375, %v1407_v16  ;;  %v233_v27 = vadd.f32 %v213_v11, %v193_v7  ;;  %v1427_v28 = vld [vmem:[%s1376_s23 + $0x78] sm:$0xff]  ;;  %v204_v29 = vmul.f32 0.015625, %v1415_v21  ;;  %v205_v30 = vmul.f32 0.015625, %v1418_v22  ;;  %v1435_v33 = vld [vmem:[%s1376_s23 + $0x80] sm:$0xff]  ;;  %v1438_v34 = vld [vmem:[%s1376_s23 + $0x88] sm:$0xff] }
  0x3c   : > { %v1432_v31 = vmul.f32 0.09375, %v1421_v23  ;;  %v272_v32 = vadd.f32 %v252_v12, %v232_v18  ;;  %v1441_v35 = vmul.f32 0.09375, %v1427_v28  ;;  %v1443_v36 = vadd.f32 %v220_v25, %v200_v17  ;;  %v1451_v39 = vld [vmem:[%s1376_s23 + $0x38] sm:$0xff]  ;;  %p152_p7 = scmp.lt.s32.totalorder %s1256_s9, 1 }
  0x3d   : > { %v1445_v37 = vadd.f32 %v221_v26, %v201_v24  ;;  %v1448_v38 = vmul.f32 0.234375, %v1401_v14  ;;  %v1455_v41 = vmul.f32 0.234375, %v1435_v33  ;;  %v1458_v42 = vmul.f32 0.234375, %v1438_v34 }
  0x3e   : > { %v244_v40 = vadd.f32 %v1432_v31, %v204_v29  ;;  %v273_v43 = vadd.f32 %v253_v13, %v233_v27  ;;  %v245_v44 = vadd.f32 %v1441_v35, %v205_v30  ;;  %v293_v45 = vmul.f32 0.3125, %v1451_v39  ;;  %v1508_v27 = vld [vmem:[%s1376_s23 + $0x90] sm:$0xff]  ;;  %s1870_s9 = smov (!%p152_p7, %s1256_s9), 1 }
  0x3f   : > { %1842 = vst [vmem:[#allocation5_spill] sm:$0xff] %v1458_v42  ;;  %v312_v46 = vadd.f32 %v292_v20, %v272_v32  ;;  %v194_v47 = vmul.f32 0.015625, %v162_v2  ;;  %v195_v49 = vmul.f32 0.015625, %v163_v3  ;;  %v202_v50 = vmul.f32 0.015625, %v1404_v15  ;;  %s1126_s17 = smul.u32 160, %s1870_s9 }
  0x40   : > { %v1463_v48 = vadd.f32 %v1455_v41, %v244_v40  ;;  %v203_v51 = vmul.f32 0.015625, %v1407_v16  ;;  %v1468_v52 = vadd.f32 %v1458_v42, %v245_v44  ;;  %v313_v53 = vadd.f32 %v293_v45, %v273_v43 }
  0x41   : > { %v336_v54 = vadd.f32 %v312_v46, %v1411_v19  ;;  %v1472_v55 = vmul.f32 0.015625, %v1421_v23  ;;  %v1475_v56 = vmul.f32 0.015625, %v1427_v28  ;;  %v214_v57 = vmul.f32 0.09375, %v1387_v4  ;;  %s1566_s25 = scalar_lea.vmem %s1834_s1, %s1126_s17 }
  0x42   : > { %1843 = vst [vmem:[#allocation6_spill] sm:$0xff] %v1463_v48  ;;  %1844 = vst [vmem:[#allocation7_spill] sm:$0xff] %v1468_v52  ;;  %v215_v58 = vmul.f32 0.09375, %v1390_v5  ;;  %v1480_v59 = vmul.f32 0.09375, %v1415_v21  ;;  %v337_v60 = vadd.f32 %v313_v53, %v1448_v38  ;;  %vm840_vm4 = vcmask 1042432  }
  0x43   : > { %v364_v61 = vadd.f32 %v336_v54, %v220_v25  ;;  %vm931_vm5 = vcmask 1041408   ;;  %v1484_v62 = vmul.f32 0.09375, %v1418_v22  ;;  %v1487_v63 = vmul.f32 0.09375, %v1435_v33 }
  0x44   : > { %v1490_v0 = vmul.f32 0.09375, %v1438_v34  ;;  %v234_v1 = vadd.f32 %v214_v57, %v194_v47  ;;  %v235_v2 = vadd.f32 %v215_v58, %v195_v49  ;;  %v1493_v3 = vadd.f32 %v1480_v59, %v202_v50 }
  0x45   : > { %1845 = vst [vmem:[#allocation8_spill] sm:$0xff] %v1487_v63  ;;  %v365_v6 = vadd.f32 %v337_v60, %v221_v26  ;;  %v396_v7 = vadd.f32 %v364_v61, %v204_v29  ;;  %v1496_v8 = vadd.f32 %v1484_v62, %v203_v51  ;;  %v246_v11 = vadd.f32 %v1487_v63, %v1472_v55  ;;  %v1511_v29 = vld [vmem:[%s1376_s23 + $0x98] sm:$0xff] }
  0x46   : > { %1846 = vst [vmem:[#allocation9_spill] sm:$0xff] %v1490_v0  ;;  %v247_v12 = vadd.f32 %v1490_v0, %v1475_v56  ;;  %v254_v13 = vmul.f32 0.234375, %v1393_v9  ;;  %v255_v17 = vmul.f32 0.234375, %v1451_v39  ;;  %v1505_v18 = vmul.f32 0.234375, %v1404_v15 }
  0x47   : > { %v397_v20 = vadd.f32 %v365_v6, %v205_v30  ;;  %v416_v24 = vmul.f32 0.015625, %v396_v7  ;;  %v436_v25 = vmul.f32 0.09375, %v396_v7  ;;  %v547_v26 = vmul.f32 0.234375, %v396_v7 }
  0x48   : > { %v658_v32 = vmul.f32 0.3125, %v396_v7  ;;  %v1514_v40 = vmul.f32 0.234375, %v1407_v16  ;;  %v1517_v43 = vmul.f32 0.234375, %v1508_v27  ;;  %v1520_v44 = vmul.f32 0.234375, %v1511_v29 }
  0x49   : > { %v417_v45 = vmul.f32 0.015625, %v397_v20  ;;  %v437_v46 = vmul.f32 0.09375, %v397_v20  ;;  %v477_v30 = vrot.slane %v436_v25, 1  ;;  %v548_v47 = vmul.f32 0.234375, %v397_v20 }
  0x4a   : > { %v588_v49 = vrot.slane %v547_v26, 2  ;;  %v659_v50 = vmul.f32 0.3125, %v397_v20  ;;  %v699_v51 = vrot.slane %v658_v32, 3  ;;  %v770_v53 = vrot.slane %v547_v26, 4 }
  0x4b   : > { %v478_v54 = vrot.slane %v437_v46, 1  ;;  %v589_v57 = vrot.slane %v548_v47, 2  ;;  %v771_v58 = vrot.slane %v548_v47, 4  ;;  %v841_v60 = vrot.slane %v436_v25, 5 }
  0x4c   : > { %v700_v61 = vrot.slane %v659_v50, 3  ;;  %v842_v6 = vrot.slane %v437_v46, 5  ;;  %v932_v7 = vrot.slane %v416_v24, 6  ;;  %v933_v52 = vrot.slane %v417_v45, 6 }
  0x4d   : > { %v479_v48 = vsel %vm476_vm0, %v477_v30, %v478_v54  ;;  %v528_v42 = vadd.f32 %v478_v54, %v417_v45  ;;  %v590_v0 = vsel %vm587_vm1, %v588_v49, %v589_v57  ;;  %v772_v63 = vsel %vm769_vm2, %v770_v53, %v771_v58 }
  0x4e   : > { %v527_v20 = vadd.f32 %v479_v48, %v416_v24  ;;  %v701_v26 = vsel %vm698_vm3, %v699_v51, %v700_v61  ;;  %v843_v25 = vsel %vm840_vm4, %v841_v60, %v842_v6  ;;  %v934_v32 = vsel %vm931_vm5, %v932_v7, %v933_v52 }
  0x4f   : > { %v639_v46 = vadd.f32 %v589_v57, %v528_v42  ;;  %v274_v47 = vadd.f32 %v254_v13, %v234_v1  ;;  %v275_v50 = vadd.f32 %v255_v17, %v235_v2  ;;  %v1535_v45 = vadd.f32 %v1517_v43, %v246_v11 }
  0x50   : > { %v638_v30 = vadd.f32 %v590_v0, %v527_v20  ;;  %v1538_v49 = vadd.f32 %v1520_v44, %v247_v12  ;;  %v294_v53 = vmul.f32 0.3125, %v1396_v10  ;;  %v295_v48 = vmul.f32 0.3125, %v1401_v14 }
  0x51   : > { %1847 = vst [vmem:[#allocation10_spill] sm:$0xff] %v1535_v45  ;;  %v750_v24 = vadd.f32 %v700_v61, %v639_v46  ;;  %v196_v51 = vmul.f32 0.015625, %v1387_v4  ;;  %v197_v54 = vmul.f32 0.015625, %v1390_v5  ;;  %v1545_v42 = vmul.f32 0.015625, %v1435_v33 }
  0x52   : > { %1848 = vst [vmem:[#allocation11_spill] sm:$0xff] %v1538_v49  ;;  %v749_v1 = vadd.f32 %v701_v26, %v638_v30  ;;  %v314_v2 = vadd.f32 %v294_v53, %v274_v47  ;;  %v315_v11 = vadd.f32 %v295_v48, %v275_v50  ;;  %v1549_v0 = vmul.f32 0.015625, %v1438_v34  ;;  %v1571_v50 = vld [vmem:[%s1376_s23 + $0xa0] sm:$0xff]  ;;  %v1576_v53 = vld [vmem:[%s1376_s23 + $0xa8] sm:$0xff] }
  0x53   : > { %v821_v12 = vadd.f32 %v771_v58, %v750_v24  ;;  %v216_v13 = vmul.f32 0.09375, %v1393_v9  ;;  %v217_v17 = vmul.f32 0.09375, %v1451_v39  ;;  %v1554_v4 = vmul.f32 0.09375, %v1508_v27 }
  0x54   : > { %v820_v5 = vadd.f32 %v772_v63, %v749_v1  ;;  %v338_v57 = vadd.f32 %v314_v2, %v1505_v18  ;;  %v339_v60 = vadd.f32 %v315_v11, %v1514_v40  ;;  %v1559_v61 = vmul.f32 0.09375, %v1511_v29 }
  0x55   : > { %v892_v7 = vadd.f32 %v842_v6, %v821_v12  ;;  %v236_v20 = vadd.f32 %v216_v13, %v196_v51  ;;  %v237_v58 = vadd.f32 %v217_v17, %v197_v54  ;;  %v248_v26 = vadd.f32 %v1554_v4, %v1545_v42 }
  0x56   : > { %v891_v63 = vadd.f32 %v843_v25, %v820_v5  ;;  %v366_v46 = vadd.f32 %v338_v57, %v1480_v59  ;;  %v367_v47 = vadd.f32 %v339_v60, %v1484_v62  ;;  %v249_v6 = vadd.f32 %v1559_v61, %v1549_v0 }
  0x57   : > { %v983_v30 = vadd.f32 %v933_v52, %v892_v7  ;;  %v1579_v48 = vmul.f32 0.234375, %v1415_v21  ;;  %v1582_v24 = vmul.f32 0.234375, %v1418_v22  ;;  %v1585_v25 = vmul.f32 0.234375, %v1571_v50 }
  0x58   : > { %v982_v59 = vadd.f32 %v934_v32, %v891_v63  ;;  %v398_v62 = vadd.f32 %v366_v46, %v1472_v55  ;;  %v399_v51 = vadd.f32 %v367_v47, %v1475_v56  ;;  %v1590_v54 = vmul.f32 0.234375, %v1576_v53 }
  0x59   : > { %1849 = vst [vmem:[#allocation12_spill] sm:$0xff] %v1585_v25  ;;  %1003 = vst [vmem:[%s1566_s25 + $0x8] sm:$0x3] %v983_v30  ;;  %v276_v52 = vadd.f32 %v1411_v19, %v236_v20  ;;  %v277_v1 = vadd.f32 %v1448_v38, %v237_v58  ;;  %v1596_v2 = vadd.f32 %v1585_v25, %v248_v26  ;;  %v296_v11 = vmul.f32 0.3125, %v1404_v15 }
  0x5a   : > { %1002 = vst [vmem:[%s1566_s25] sm:$0xff] %v982_v59  ;;  %v418_v12 = vmul.f32 0.015625, %v398_v62  ;;  %v419_v32 = vmul.f32 0.015625, %v399_v51  ;;  %v438_v13 = vmul.f32 0.09375, %v398_v62  ;;  %v439_v55 = vmul.f32 0.09375, %v399_v51 }
  0x5b   : > { %1850 = vst [vmem:[#allocation13_spill] sm:$0xff] %v1596_v2  ;;  %v549_v17 = vmul.f32 0.234375, %v398_v62  ;;  %v550_v56 = vmul.f32 0.234375, %v399_v51  ;;  %v660_v5 = vmul.f32 0.3125, %v398_v62  ;;  %v661_v57 = vmul.f32 0.3125, %v399_v51 }
  0x5c   : > { %v480_v60 = vrot.slane %v438_v13, 1  ;;  %v481_v7 = vrot.slane %v439_v55, 1  ;;  %v844_v63 = vrot.slane %v438_v13, 5  ;;  %v845_v19 = vrot.slane %v439_v55, 5 }
  0x5d   : > { %v591_v20 = vrot.slane %v549_v17, 2  ;;  %v592_v38 = vrot.slane %v550_v56, 2  ;;  %v702_v58 = vrot.slane %v660_v5, 3  ;;  %v703_v26 = vrot.slane %v661_v57, 3 }
  0x5e   : > { %v482_v46 = vsel %vm476_vm0, %v480_v60, %v481_v7  ;;  %v530_v15 = vadd.f32 %v481_v7, %v419_v32  ;;  %v773_v47 = vrot.slane %v549_v17, 4  ;;  %v774_v30 = vrot.slane %v550_v56, 4 }
  0x5f   : > { %v529_v59 = vadd.f32 %v482_v46, %v418_v12  ;;  %v593_v2 = vsel %vm587_vm1, %v591_v20, %v592_v38  ;;  %v704_v49 = vsel %vm698_vm3, %v702_v58, %v703_v26  ;;  %v846_v62 = vsel %vm840_vm4, %v844_v63, %v845_v19  ;;  %v1632_v46 = vld [vmem:[%s1376_s23 + $0xb0] sm:$0xff] }
  0x60   : > { %v775_v51 = vsel %vm769_vm2, %v773_v47, %v774_v30  ;;  %v935_v13 = vrot.slane %v418_v12, 6  ;;  %v936_v55 = vrot.slane %v419_v32, 6  ;;  %v641_v45 = vadd.f32 %v592_v38, %v530_v15  ;;  %v1635_v15 = vld [vmem:[%s1376_s23 + $0xb8] sm:$0xff] }
  0x61   : > { %v640_v25 = vadd.f32 %v593_v2, %v529_v59  ;;  %v1606_v5 = vadd.f32 %v1590_v54, %v249_v6  ;;  %v297_v57 = vmul.f32 0.3125, %v1407_v16  ;;  %v316_v17 = vadd.f32 %v296_v11, %v276_v52 }
  0x62   : > { %v937_v56 = vsel %vm931_vm5, %v935_v13, %v936_v55  ;;  %v752_v60 = vadd.f32 %v703_v26, %v641_v45  ;;  %v198_v7 = vmul.f32 0.015625, %v1393_v9  ;;  %v199_v20 = vmul.f32 0.015625, %v1451_v39 }
  0x63   : > { %1851 = vst [vmem:[#allocation14_spill] sm:$0xff] %v1606_v5  ;;  %v751_v63 = vadd.f32 %v704_v49, %v640_v25  ;;  %v317_v58 = vadd.f32 %v297_v57, %v277_v1  ;;  %v340_v12 = vadd.f32 %v316_v17, %v1579_v48  ;;  %v1614_v32 = vmul.f32 0.015625, %v1508_v27 }
  0x64   : > { %v823_v6 = vadd.f32 %v774_v30, %v752_v60  ;;  %v1617_v16 = vmul.f32 0.015625, %v1511_v29  ;;  %v218_v52 = vmul.f32 0.09375, %v1396_v10  ;;  %v219_v45 = vmul.f32 0.09375, %v1401_v14 }
  0x65   : > { %v822_v9 = vadd.f32 %v775_v51, %v751_v63  ;;  %v341_v39 = vadd.f32 %v317_v58, %v1582_v24  ;;  %v368_v49 = vadd.f32 %v340_v12, %v1432_v31  ;;  %v1624_v25 = vmul.f32 0.09375, %v1571_v50 }
  0x66   : > { %v894_v1 = vadd.f32 %v845_v19, %v823_v6  ;;  %v1627_v2 = vmul.f32 0.09375, %v1576_v53  ;;  %v238_v11 = vadd.f32 %v218_v52, %v198_v7  ;;  %v239_v38 = vadd.f32 %v219_v45, %v199_v20 }
  0x67   : > { %v893_v26 = vadd.f32 %v846_v62, %v822_v9  ;;  %v369_v10 = vadd.f32 %v341_v39, %v1441_v35  ;;  %v400_v14 = vadd.f32 %v368_v49, %v1545_v42  ;;  %v250_v31 = vadd.f32 %v1624_v25, %v1614_v32 }
  0x68   : > { %v985_v19 = vadd.f32 %v936_v55, %v894_v1  ;;  %v251_v47 = vadd.f32 %v1627_v2, %v1617_v16  ;;  %v262_v30 = vmul.f32 0.234375, %v1421_v23  ;;  %v263_v59 = vmul.f32 0.234375, %v1427_v28 }
  0x69   : > { %v984_v62 = vadd.f32 %v937_v56, %v893_v26  ;;  %v401_v35 = vadd.f32 %v369_v10, %v1549_v0  ;;  %v420_v42 = vmul.f32 0.015625, %v400_v14  ;;  %v440_v51 = vmul.f32 0.09375, %v400_v14 }
  0x6a   : > { %1005 = vst [vmem:[%s1566_s25 + $0x18] sm:$0x3] %v985_v19  ;;  %v551_v13 = vmul.f32 0.234375, %v400_v14  ;;  %v662_v57 = vmul.f32 0.3125, %v400_v14  ;;  %v1646_v17 = vmul.f32 0.234375, %v1632_v46  ;;  %v1649_v55 = vmul.f32 0.234375, %v1635_v15 }
  0x6b   : > { %1004 = vst [vmem:[%s1566_s25 + $0x10] sm:$0xff] %v984_v62  ;;  %v421_v60 = vmul.f32 0.015625, %v401_v35  ;;  %v441_v7 = vmul.f32 0.09375, %v401_v35  ;;  %v483_v20 = vrot.slane %v440_v51, 1  ;;  %v552_v63 = vmul.f32 0.234375, %v401_v35 }
  0x6c   : > { %v594_v58 = vrot.slane %v551_v13, 2  ;;  %v663_v56 = vmul.f32 0.3125, %v401_v35  ;;  %v705_v12 = vrot.slane %v662_v57, 3  ;;  %v776_v0 = vrot.slane %v551_v13, 4 }
  0x6d   : > { %v484_v6 = vrot.slane %v441_v7, 1  ;;  %v595_v52 = vrot.slane %v552_v63, 2  ;;  %v777_v45 = vrot.slane %v552_v63, 4  ;;  %v847_v9 = vrot.slane %v440_v51, 5 }
  0x6e   : > { %v706_v39 = vrot.slane %v663_v56, 3  ;;  %v848_v49 = vrot.slane %v441_v7, 5  ;;  %v938_v1 = vrot.slane %v420_v42, 6  ;;  %v939_v26 = vrot.slane %v421_v60, 6 }
  0x6f   : > { %v485_v10 = vsel %vm476_vm0, %v483_v20, %v484_v6  ;;  %v532_v14 = vadd.f32 %v484_v6, %v421_v60  ;;  %v596_v19 = vsel %vm587_vm1, %v594_v58, %v595_v52  ;;  %v778_v62 = vsel %vm769_vm2, %v776_v0, %v777_v45 }
  0x70   : > { %v531_v5 = vadd.f32 %v485_v10, %v420_v42  ;;  %v707_v35 = vsel %vm698_vm3, %v705_v12, %v706_v39  ;;  %v849_v13 = vsel %vm840_vm4, %v847_v9, %v848_v49  ;;  %v940_v57 = vsel %vm931_vm5, %v938_v1, %v939_v26  ;;  %v1853_v10 = vld [vmem:[#allocation9_spill] sm:$0xff] }
  0x71   : > { %v643_v63 = vadd.f32 %v595_v52, %v532_v14  ;;  %v278_v51 = vadd.f32 %v1505_v18, %v238_v11  ;;  %v279_v7 = vadd.f32 %v1514_v40, %v239_v38  ;;  %v1661_v56 = vadd.f32 %v1646_v17, %v250_v31 }
  0x72   : > { %v642_v60 = vadd.f32 %v596_v19, %v531_v5  ;;  %v1664_v20 = vadd.f32 %v1649_v55, %v251_v47  ;;  %v298_v42 = vmul.f32 0.3125, %v1415_v21  ;;  %v299_v58 = vmul.f32 0.3125, %v1418_v22  ;;  %v1854_v19 = vld [vmem:[#allocation5_spill] sm:$0xff] }
  0x73   : > { %v754_v12 = vadd.f32 %v706_v39, %v643_v63  ;;  %v280_v0 = vadd.f32 %v1579_v48, %v1443_v36  ;;  %v281_v18 = vadd.f32 %v1582_v24, %v1445_v37  ;;  %v300_v40 = vmul.f32 0.3125, %v1421_v23 }
  0x74   : > { %v753_v11 = vadd.f32 %v707_v35, %v642_v60  ;;  %v318_v38 = vadd.f32 %v298_v42, %v278_v51  ;;  %v319_v31 = vadd.f32 %v299_v58, %v279_v7  ;;  %v301_v5 = vmul.f32 0.3125, %v1427_v28  ;;  %v1852_v28 = vld [vmem:[#allocation8_spill] sm:$0xff] }
  0x75   : > { %v825_v47 = vadd.f32 %v777_v45, %v754_v12  ;;  %v320_v6 = vadd.f32 %v300_v40, %v280_v0  ;;  %v384_v21 = vmul.f32 0.015625, %v1571_v50  ;;  %v385_v22 = vmul.f32 0.015625, %v1576_v53 }
  0x76   : > { %v824_v52 = vadd.f32 %v778_v62, %v753_v11  ;;  %v342_v9 = vadd.f32 %v318_v38, %v262_v30  ;;  %v343_v39 = vadd.f32 %v319_v31, %v263_v59  ;;  %v321_v36 = vadd.f32 %v301_v5, %v281_v18 }
  0x77   : > { %v896_v48 = vadd.f32 %v848_v49, %v825_v47  ;;  %v344_v37 = vadd.f32 %v320_v6, %v1455_v41  ;;  %v282_v23 = vadd.f32 %v262_v30, %v1493_v3  ;;  %v283_v24 = vadd.f32 %v263_v59, %v1496_v8 }
  0x78   : > { %v895_v1 = vadd.f32 %v849_v13, %v824_v52  ;;  %v370_v45 = vadd.f32 %v342_v9, %v1852_v28  ;;  %v371_v14 = vadd.f32 %v343_v39, %v1853_v10  ;;  %v345_v35 = vadd.f32 %v321_v36, %v1854_v19 }
  0x79   : > { %v987_v62 = vadd.f32 %v939_v26, %v896_v48  ;;  %v372_v63 = vadd.f32 %v344_v37, %v1554_v4  ;;  %v302_v49 = vmul.f32 0.3125, %v1435_v33  ;;  %v303_v51 = vmul.f32 0.3125, %v1438_v34 }
  0x7a   : > { %v986_v41 = vadd.f32 %v940_v57, %v895_v1  ;;  %v402_v3 = vadd.f32 %v370_v45, %v1614_v32  ;;  %v403_v8 = vadd.f32 %v371_v14, %v1617_v16  ;;  %v373_v30 = vadd.f32 %v345_v35, %v1559_v61 }
  0x7b   : > { %1007 = vst [vmem:[%s1566_s25 + $0x28] sm:$0x3] %v987_v62  ;;  %v404_v59 = vadd.f32 %v384_v21, %v372_v63  ;;  %v1689_v13 = vadd.f32 %v302_v49, %v282_v23  ;;  %v1691_v7 = vadd.f32 %v303_v51, %v283_v24  ;;  %v1694_v26 = vmul.f32 0.015625, %v1632_v46 }
  0x7c   : > { %1006 = vst [vmem:[%s1566_s25 + $0x20] sm:$0xff] %v986_v41  ;;  %v422_v33 = vmul.f32 0.015625, %v402_v3  ;;  %v423_v4 = vmul.f32 0.015625, %v403_v8  ;;  %v442_v34 = vmul.f32 0.09375, %v402_v3  ;;  %v443_v57 = vmul.f32 0.09375, %v403_v8 }
  0x7d   : > { %v553_v60 = vmul.f32 0.234375, %v402_v3  ;;  %v554_v32 = vmul.f32 0.234375, %v403_v8  ;;  %v664_v42 = vmul.f32 0.3125, %v402_v3  ;;  %v665_v16 = vmul.f32 0.3125, %v403_v8 }
  0x7e   : > { %v486_v58 = vrot.slane %v442_v34, 1  ;;  %v487_v61 = vrot.slane %v443_v57, 1  ;;  %v850_v12 = vrot.slane %v442_v34, 5  ;;  %v851_v0 = vrot.slane %v443_v57, 5 }
  0x7f   : > { %v597_v18 = vrot.slane %v553_v60, 2  ;;  %v598_v40 = vrot.slane %v554_v32, 2  ;;  %v708_v11 = vrot.slane %v664_v42, 3  ;;  %v709_v38 = vrot.slane %v665_v16, 3 }
  0x80   : > { %v488_v31 = vsel %vm476_vm0, %v486_v58, %v487_v61  ;;  %v534_v5 = vadd.f32 %v487_v61, %v423_v4  ;;  %v779_v47 = vrot.slane %v553_v60, 4  ;;  %v780_v6 = vrot.slane %v554_v32, 4 }
  0x81   : > { %v533_v21 = vadd.f32 %v488_v31, %v422_v33  ;;  %v599_v52 = vsel %vm587_vm1, %v597_v18, %v598_v40  ;;  %v710_v9 = vsel %vm698_vm3, %v708_v11, %v709_v38  ;;  %v852_v39 = vsel %vm840_vm4, %v850_v12, %v851_v0 }
  0x82   : > { %v781_v36 = vsel %vm769_vm2, %v779_v47, %v780_v6  ;;  %v941_v48 = vrot.slane %v422_v33, 6  ;;  %v942_v37 = vrot.slane %v423_v4, 6  ;;  %v645_v23 = vadd.f32 %v598_v40, %v534_v5 }
  0x83   : > { %v644_v24 = vadd.f32 %v599_v52, %v533_v21  ;;  %v405_v1 = vadd.f32 %v385_v22, %v373_v30  ;;  %v424_v28 = vmul.f32 0.015625, %v404_v59  ;;  %v444_v45 = vmul.f32 0.09375, %v404_v59 }
  0x84   : > { %v943_v10 = vsel %vm931_vm5, %v941_v48, %v942_v37  ;;  %v756_v14 = vadd.f32 %v709_v38, %v645_v23  ;;  %v555_v19 = vmul.f32 0.234375, %v404_v59  ;;  %v666_v35 = vmul.f32 0.3125, %v404_v59 }
  0x85   : > { %v755_v62 = vadd.f32 %v710_v9, %v644_v24  ;;  %v1703_v63 = vmul.f32 0.015625, %v405_v1  ;;  %v445_v49 = vmul.f32 0.09375, %v405_v1  ;;  %v489_v51 = vrot.slane %v444_v45, 1 }
  0x86   : > { %v827_v41 = vadd.f32 %v780_v6, %v756_v14  ;;  %v556_v3 = vmul.f32 0.234375, %v405_v1  ;;  %v600_v8 = vrot.slane %v555_v19, 2  ;;  %v667_v33 = vmul.f32 0.3125, %v405_v1 }
  0x87   : > { %v826_v4 = vadd.f32 %v781_v36, %v755_v62  ;;  %v490_v34 = vrot.slane %v445_v49, 1  ;;  %v711_v57 = vrot.slane %v666_v35, 3  ;;  %v782_v22 = vrot.slane %v555_v19, 4  ;;  %v1728_v19 = vld [vmem:[%s1376_s23 + $0xc0] sm:$0xff]  ;;  %v1856_v62 = vld [vmem:[#allocation7_spill] sm:$0xff] }
  0x88   : > { %v898_v30 = vadd.f32 %v851_v0, %v827_v41  ;;  %v601_v60 = vrot.slane %v556_v3, 2  ;;  %v712_v32 = vrot.slane %v667_v33, 3  ;;  %v783_v42 = vrot.slane %v556_v3, 4 }
  0x89   : > { %v897_v16 = vadd.f32 %v852_v39, %v826_v4  ;;  %v491_v59 = vsel %vm476_vm0, %v489_v51, %v490_v34  ;;  %v536_v58 = vadd.f32 %v490_v34, %v1703_v63  ;;  %v853_v61 = vrot.slane %v444_v45, 5 }
  0x8a   : > { %v989_v12 = vadd.f32 %v942_v37, %v898_v30  ;;  %v535_v18 = vadd.f32 %v491_v59, %v424_v28  ;;  %v602_v40 = vsel %vm587_vm1, %v600_v8, %v601_v60  ;;  %v713_v11 = vsel %vm698_vm3, %v711_v57, %v712_v32 }
  0x8b   : > { %v988_v38 = vadd.f32 %v943_v10, %v897_v16  ;;  %v784_v0 = vsel %vm769_vm2, %v782_v22, %v783_v42  ;;  %v854_v31 = vrot.slane %v445_v49, 5  ;;  %v944_v5 = vrot.slane %v424_v28, 6 }
  0x8c   : > { %1009 = vst [vmem:[%s1566_s25 + $0x38] sm:$0x3] %v989_v12  ;;  %v646_v47 = vadd.f32 %v602_v40, %v535_v18  ;;  %v945_v6 = vrot.slane %v1703_v63, 6  ;;  %v647_v21 = vadd.f32 %v601_v60, %v536_v58  ;;  %v346_v52 = vadd.f32 %v1689_v13, %v1517_v43  ;;  %v1855_v13 = vld [vmem:[#allocation6_spill] sm:$0xff] }
  0x8d   : > { %1008 = vst [vmem:[%s1566_s25 + $0x30] sm:$0xff] %v988_v38  ;;  %v855_v9 = vsel %vm840_vm4, %v853_v61, %v854_v31  ;;  %v347_v39 = vadd.f32 %v1691_v7, %v1520_v44  ;;  %v387_v36 = vmul.f32 0.015625, %v1635_v15  ;;  %v304_v48 = vmul.f32 0.3125, %v1508_v27 }
  0x8e   : > { %v757_v37 = vadd.f32 %v713_v11, %v646_v47  ;;  %v946_v23 = vsel %vm931_vm5, %v944_v5, %v945_v6  ;;  %v758_v24 = vadd.f32 %v712_v32, %v647_v21  ;;  %v374_v1 = vadd.f32 %v346_v52, %v1624_v25  ;;  %v1857_v25 = vld [vmem:[#allocation12_spill] sm:$0xff] }
  0x8f   : > { %v375_v28 = vadd.f32 %v347_v39, %v1627_v2  ;;  %v305_v43 = vmul.f32 0.3125, %v1511_v29  ;;  %v324_v45 = vadd.f32 %v304_v48, %v1855_v13  ;;  %v356_v10 = vmul.f32 0.09375, %v1632_v46 }
  0x90   : > { %v828_v14 = vadd.f32 %v784_v0, %v757_v37  ;;  %v829_v44 = vadd.f32 %v783_v42, %v758_v24  ;;  %v406_v7 = vadd.f32 %v1694_v26, %v374_v1  ;;  %v357_v27 = vmul.f32 0.09375, %v1635_v15 }
  0x91   : > { %v407_v35 = vadd.f32 %v387_v36, %v375_v28  ;;  %v325_v63 = vadd.f32 %v305_v43, %v1856_v62  ;;  %v348_v49 = vadd.f32 %v324_v45, %v1857_v25  ;;  %v388_v2 = vmul.f32 0.015625, %v1728_v19 }
  0x92   : > { %v899_v29 = vadd.f32 %v855_v9, %v828_v14  ;;  %v900_v51 = vadd.f32 %v854_v31, %v829_v44  ;;  %v426_v41 = vmul.f32 0.015625, %v406_v7  ;;  %v446_v3 = vmul.f32 0.09375, %v406_v7  ;;  %v1741_v9 = vld [vmem:[%s1376_s23 + $0xc8] sm:$0xff] }
  0x93   : > { %v427_v8 = vmul.f32 0.015625, %v407_v35  ;;  %v447_v33 = vmul.f32 0.09375, %v407_v35  ;;  %v557_v26 = vmul.f32 0.234375, %v406_v7  ;;  %v558_v4 = vmul.f32 0.234375, %v407_v35 }
  0x94   : > { %v990_v34 = vadd.f32 %v946_v23, %v899_v29  ;;  %v991_v57 = vadd.f32 %v945_v6, %v900_v51  ;;  %v492_v22 = vrot.slane %v446_v3, 1  ;;  %v668_v30 = vmul.f32 0.3125, %v406_v7 }
  0x95   : > { %v493_v60 = vrot.slane %v447_v33, 1  ;;  %v603_v32 = vrot.slane %v557_v26, 2  ;;  %v604_v42 = vrot.slane %v558_v4, 2  ;;  %v669_v16 = vmul.f32 0.3125, %v407_v35  ;;  %v1858_v35 = vld [vmem:[#allocation10_spill] sm:$0xff] }
  0x96   : > { %1010 = vst [vmem:[%s1566_s25 + $0x40] sm:$0xff] %v990_v34  ;;  %1011 = vst [vmem:[%s1566_s25 + $0x48] sm:$0x3] %v991_v57  ;;  %v714_v59 = vrot.slane %v668_v30, 3  ;;  %v785_v58 = vrot.slane %v557_v26, 4  ;;  %v786_v61 = vrot.slane %v558_v4, 4  ;;  %v349_v39 = vadd.f32 %v325_v63, %v1590_v54 }
  0x97   : > { %v856_v12 = vrot.slane %v446_v3, 5  ;;  %v494_v18 = vsel %vm476_vm0, %v492_v22, %v493_v60  ;;  %v538_v40 = vadd.f32 %v493_v60, %v427_v8  ;;  %v605_v11 = vsel %vm587_vm1, %v603_v32, %v604_v42 }
  0x98   : > { %v715_v38 = vrot.slane %v669_v16, 3  ;;  %v537_v0 = vadd.f32 %v494_v18, %v426_v41  ;;  %v787_v31 = vsel %vm769_vm2, %v785_v58, %v786_v61  ;;  %v857_v5 = vrot.slane %v447_v33, 5 }
  0x99   : > { %v947_v47 = vrot.slane %v426_v41, 6  ;;  %v948_v21 = vrot.slane %v427_v8, 6  ;;  %v649_v52 = vadd.f32 %v604_v42, %v538_v40  ;;  %v376_v37 = vadd.f32 %v356_v10, %v348_v49 }
  0x9a   : > { %v716_v6 = vsel %vm698_vm3, %v714_v59, %v715_v38  ;;  %v648_v36 = vadd.f32 %v605_v11, %v537_v0  ;;  %v858_v48 = vsel %vm840_vm4, %v856_v12, %v857_v5  ;;  %v389_v23 = vmul.f32 0.015625, %v1741_v9 }
  0x9b   : > { %v949_v24 = vsel %vm931_vm5, %v947_v47, %v948_v21  ;;  %v760_v1 = vadd.f32 %v715_v38, %v649_v52  ;;  %v377_v28 = vadd.f32 %v357_v27, %v349_v39  ;;  %v306_v43 = vmul.f32 0.3125, %v1571_v50  ;;  %v1760_v47 = vld [vmem:[%s1376_s23 + $0xd0] sm:$0xff] }
  0x9c   : > { %v759_v13 = vadd.f32 %v716_v6, %v648_v36  ;;  %v408_v45 = vadd.f32 %v388_v2, %v376_v37  ;;  %v307_v14 = vmul.f32 0.3125, %v1576_v53  ;;  %v358_v44 = vmul.f32 0.09375, %v1728_v19  ;;  %v1763_v6 = vld [vmem:[%s1376_s23 + $0xd8] sm:$0xff] }
  0x9d   : > { %v831_v7 = vadd.f32 %v786_v61, %v760_v1  ;;  %v409_v54 = vadd.f32 %v389_v23, %v377_v28  ;;  %v326_v62 = vadd.f32 %v306_v43, %v1858_v35  ;;  %v359_v10 = vmul.f32 0.09375, %v1741_v9 }
  0x9e   : > { %v830_v63 = vadd.f32 %v787_v31, %v759_v13  ;;  %v428_v25 = vmul.f32 0.015625, %v408_v45  ;;  %v448_v49 = vmul.f32 0.09375, %v408_v45  ;;  %v559_v29 = vmul.f32 0.234375, %v408_v45 }
  0x9f   : > { %v902_v51 = vadd.f32 %v857_v5, %v831_v7  ;;  %v429_v27 = vmul.f32 0.015625, %v409_v54  ;;  %v449_v50 = vmul.f32 0.09375, %v409_v54  ;;  %v560_v41 = vmul.f32 0.234375, %v409_v54 }
  0xa0   : > { %v901_v2 = vadd.f32 %v858_v48, %v830_v63  ;;  %v495_v3 = vrot.slane %v448_v49, 1  ;;  %v606_v53 = vrot.slane %v559_v29, 2  ;;  %v670_v8 = vmul.f32 0.3125, %v408_v45 }
  0xa1   : > { %v993_v33 = vadd.f32 %v948_v21, %v902_v51  ;;  %v496_v26 = vrot.slane %v449_v50, 1  ;;  %v607_v4 = vrot.slane %v560_v41, 2  ;;  %v671_v34 = vmul.f32 0.3125, %v409_v54  ;;  %v1859_v21 = vld [vmem:[#allocation11_spill] sm:$0xff] }
  0xa2   : > { %v992_v57 = vadd.f32 %v949_v24, %v901_v2  ;;  %v717_v22 = vrot.slane %v670_v8, 3  ;;  %v788_v30 = vrot.slane %v559_v29, 4  ;;  %v789_v60 = vrot.slane %v560_v41, 4 }
  0xa3   : > { %1013 = vst [vmem:[%s1566_s25 + $0x58] sm:$0x3] %v993_v33  ;;  %v497_v32 = vsel %vm476_vm0, %v495_v3, %v496_v26  ;;  %v540_v42 = vadd.f32 %v496_v26, %v429_v27  ;;  %v608_v16 = vsel %vm587_vm1, %v606_v53, %v607_v4  ;;  %v718_v59 = vrot.slane %v671_v34, 3 }
  0xa4   : > { %1012 = vst [vmem:[%s1566_s25 + $0x50] sm:$0xff] %v992_v57  ;;  %v539_v58 = vadd.f32 %v497_v32, %v428_v25  ;;  %v790_v61 = vsel %vm769_vm2, %v788_v30, %v789_v60  ;;  %v859_v12 = vrot.slane %v448_v49, 5  ;;  %v860_v18 = vrot.slane %v449_v50, 5  ;;  %v1861_v49 = vld [vmem:[#allocation14_spill] sm:$0xff] }
  0xa5   : > { %v719_v40 = vsel %vm698_vm3, %v717_v22, %v718_v59  ;;  %v950_v11 = vrot.slane %v428_v25, 6  ;;  %v951_v38 = vrot.slane %v429_v27, 6  ;;  %v651_v0 = vadd.f32 %v607_v4, %v540_v42 }
  0xa6   : > { %v650_v31 = vadd.f32 %v608_v16, %v539_v58  ;;  %v861_v5 = vsel %vm840_vm4, %v859_v12, %v860_v18  ;;  %v327_v52 = vadd.f32 %v307_v14, %v1859_v21  ;;  %v350_v39 = vadd.f32 %v326_v62, %v1646_v17  ;;  %v1860_v62 = vld [vmem:[#allocation13_spill] sm:$0xff] }
  0xa7   : > { %v952_v36 = vsel %vm931_vm5, %v950_v11, %v951_v38  ;;  %v762_v48 = vadd.f32 %v718_v59, %v651_v0  ;;  %v390_v37 = vmul.f32 0.015625, %v1760_v47  ;;  %v391_v23 = vmul.f32 0.015625, %v1763_v6 }
  0xa8   : > { %v761_v24 = vadd.f32 %v719_v40, %v650_v31  ;;  %v351_v1 = vadd.f32 %v327_v52, %v1649_v55  ;;  %v378_v28 = vadd.f32 %v358_v44, %v350_v39  ;;  %v308_v43 = vmul.f32 0.3125, %v1632_v46  ;;  %v188_v52 = vld [vmem:[%s1376_s23 + $0xe0] sm:$0xff]  ;;  %v189_v39 = vld [vmem:[%s1376_s23 + $0xe8] sm:$0xff] }
  0xa9   : > { %v833_v13 = vadd.f32 %v789_v60, %v762_v48  ;;  %v309_v45 = vmul.f32 0.3125, %v1635_v15  ;;  %v332_v14 = vmul.f32 0.234375, %v1728_v19  ;;  %v333_v17 = vmul.f32 0.234375, %v1741_v9 }
  0xaa   : > { %v832_v7 = vadd.f32 %v790_v61, %v761_v24  ;;  %v379_v54 = vadd.f32 %v359_v10, %v351_v1  ;;  %v410_v35 = vadd.f32 %v390_v37, %v378_v28  ;;  %v328_v63 = vadd.f32 %v308_v43, %v1860_v62 }
  0xab   : > { %v904_v25 = vadd.f32 %v860_v18, %v833_v13  ;;  %v329_v29 = vadd.f32 %v309_v45, %v1861_v49  ;;  %v360_v55 = vmul.f32 0.09375, %v1760_v47  ;;  %v361_v46 = vmul.f32 0.09375, %v1763_v6 }
  0xac   : > { %v903_v44 = vadd.f32 %v861_v5, %v832_v7  ;;  %v411_v51 = vadd.f32 %v391_v23, %v379_v54  ;;  %v430_v15 = vmul.f32 0.015625, %v410_v35  ;;  %v450_v27 = vmul.f32 0.09375, %v410_v35 }
  0xad   : > { %v995_v50 = vadd.f32 %v951_v38, %v904_v25  ;;  %v561_v41 = vmul.f32 0.234375, %v410_v35  ;;  %v672_v2 = vmul.f32 0.3125, %v410_v35  ;;  %v352_v10 = vadd.f32 %v332_v14, %v328_v63 }
  0xae   : > { %v994_v3 = vadd.f32 %v952_v36, %v903_v44  ;;  %v431_v53 = vmul.f32 0.015625, %v411_v51  ;;  %v451_v8 = vmul.f32 0.09375, %v411_v51  ;;  %v498_v33 = vrot.slane %v450_v27, 1 }
  0xaf   : > { %1015 = vst [vmem:[%s1566_s25 + $0x68] sm:$0x3] %v995_v50  ;;  %v562_v26 = vmul.f32 0.234375, %v411_v51  ;;  %v609_v4 = vrot.slane %v561_v41, 2  ;;  %v673_v34 = vmul.f32 0.3125, %v411_v51  ;;  %v720_v57 = vrot.slane %v672_v2, 3 }
  0xb0   : > { %1014 = vst [vmem:[%s1566_s25 + $0x60] sm:$0xff] %v994_v3  ;;  %v499_v22 = vrot.slane %v451_v8, 1  ;;  %v791_v30 = vrot.slane %v561_v41, 4  ;;  %v862_v60 = vrot.slane %v450_v27, 5  ;;  %v863_v32 = vrot.slane %v451_v8, 5 }
  0xb1   : > { %v610_v42 = vrot.slane %v562_v26, 2  ;;  %v721_v16 = vrot.slane %v673_v34, 3  ;;  %v792_v59 = vrot.slane %v562_v26, 4  ;;  %v953_v58 = vrot.slane %v430_v15, 6 }
  0xb2   : > { %v500_v61 = vsel %vm476_vm0, %v498_v33, %v499_v22  ;;  %v542_v12 = vadd.f32 %v499_v22, %v431_v53  ;;  %v864_v18 = vsel %vm840_vm4, %v862_v60, %v863_v32  ;;  %v954_v40 = vrot.slane %v431_v53, 6  ;;  %v190_v60 = vld [vmem:[%s1376_s23 + $0xf0] sm:$0xff] }
  0xb3   : > { %v541_v11 = vadd.f32 %v500_v61, %v430_v15  ;;  %v611_v38 = vsel %vm587_vm1, %v609_v4, %v610_v42  ;;  %v722_v0 = vsel %vm698_vm3, %v720_v57, %v721_v16  ;;  %v793_v31 = vsel %vm769_vm2, %v791_v30, %v792_v59 }
  0xb4   : > { %v955_v5 = vsel %vm931_vm5, %v953_v58, %v954_v40  ;;  %v653_v21 = vadd.f32 %v610_v42, %v542_v12  ;;  %v353_v36 = vadd.f32 %v333_v17, %v329_v29  ;;  %v380_v48 = vadd.f32 %v360_v55, %v352_v10  ;;  %v191_v58 = vld [vmem:[%s1376_s23 + $0xf8] sm:$0xff] }
  0xb5   : > { %v652_v37 = vadd.f32 %v611_v38, %v541_v11  ;;  %v392_v23 = vmul.f32 0.015625, %v188_v52  ;;  %v393_v24 = vmul.f32 0.015625, %v189_v39  ;;  %v310_v1 = vmul.f32 0.3125, %v1728_v19 }
  0xb6   : > { %v764_v28 = vadd.f32 %v721_v16, %v653_v21  ;;  %v381_v43 = vadd.f32 %v361_v46, %v353_v36  ;;  %v311_v13 = vmul.f32 0.3125, %v1741_v9  ;;  %v334_v45 = vmul.f32 0.234375, %v1760_v47 }
  0xb7   : > { %v763_v14 = vadd.f32 %v722_v0, %v652_v37  ;;  %v412_v7 = vadd.f32 %v392_v23, %v380_v48  ;;  %v330_v54 = vadd.f32 %v310_v1, %v1661_v56  ;;  %v335_v35 = vmul.f32 0.234375, %v1763_v6 }
  0xb8   : > { %v835_v62 = vadd.f32 %v792_v59, %v764_v28  ;;  %v413_v17 = vadd.f32 %v393_v24, %v381_v43  ;;  %v331_v63 = vadd.f32 %v311_v13, %v1664_v20  ;;  %v362_v25 = vmul.f32 0.09375, %v188_v52 }
  0xb9   : > { %v834_v49 = vadd.f32 %v793_v31, %v763_v14  ;;  %v432_v29 = vmul.f32 0.015625, %v412_v7  ;;  %v452_v19 = vmul.f32 0.09375, %v412_v7  ;;  %v563_v55 = vmul.f32 0.234375, %v412_v7 }
  0xba   : > { %v906_v46 = vadd.f32 %v863_v32, %v835_v62  ;;  %v433_v9 = vmul.f32 0.015625, %v413_v17  ;;  %v453_v44 = vmul.f32 0.09375, %v413_v17  ;;  %v564_v47 = vmul.f32 0.234375, %v413_v17 }
  0xbb   : > { %v905_v51 = vadd.f32 %v864_v18, %v834_v49  ;;  %v501_v15 = vrot.slane %v452_v19, 1  ;;  %v612_v56 = vrot.slane %v563_v55, 2  ;;  %v674_v27 = vmul.f32 0.3125, %v412_v7 }
  0xbc   : > { %v997_v6 = vadd.f32 %v954_v40, %v906_v46  ;;  %v502_v50 = vrot.slane %v453_v44, 1  ;;  %v613_v41 = vrot.slane %v564_v47, 2  ;;  %v675_v20 = vmul.f32 0.3125, %v413_v17 }
  0xbd   : > { %v996_v2 = vadd.f32 %v955_v5, %v905_v51  ;;  %v723_v10 = vrot.slane %v674_v27, 3  ;;  %v794_v3 = vrot.slane %v563_v55, 4  ;;  %v795_v53 = vrot.slane %v564_v47, 4 }
  0xbe   : > { %1017 = vst [vmem:[%s1566_s25 + $0x78] sm:$0x3] %v997_v6  ;;  %v503_v8 = vsel %vm476_vm0, %v501_v15, %v502_v50  ;;  %v544_v33 = vadd.f32 %v502_v50, %v433_v9  ;;  %v614_v26 = vsel %vm587_vm1, %v612_v56, %v613_v41  ;;  %v724_v4 = vrot.slane %v675_v20, 3 }
  0xbf   : > { %1016 = vst [vmem:[%s1566_s25 + $0x70] sm:$0xff] %v996_v2  ;;  %v543_v34 = vadd.f32 %v503_v8, %v432_v29  ;;  %v796_v57 = vsel %vm769_vm2, %v794_v3, %v795_v53  ;;  %v865_v22 = vrot.slane %v452_v19, 5  ;;  %v866_v30 = vrot.slane %v453_v44, 5 }
  0xc0   : > { %v725_v32 = vsel %vm698_vm3, %v723_v10, %v724_v4  ;;  %v956_v42 = vrot.slane %v432_v29, 6  ;;  %v957_v16 = vrot.slane %v433_v9, 6  ;;  %v655_v59 = vadd.f32 %v613_v41, %v544_v33 }
  0xc1   : > { %v654_v61 = vadd.f32 %v614_v26, %v543_v34  ;;  %v867_v12 = vsel %vm840_vm4, %v865_v22, %v866_v30  ;;  %v354_v18 = vadd.f32 %v334_v45, %v330_v54  ;;  %v355_v40 = vadd.f32 %v335_v35, %v331_v63 }
  0xc2   : > { %v958_v11 = vsel %vm931_vm5, %v956_v42, %v957_v16  ;;  %v766_v38 = vadd.f32 %v724_v4, %v655_v59  ;;  %v363_v0 = vmul.f32 0.09375, %v189_v39  ;;  %v394_v31 = vmul.f32 0.015625, %v190_v60 }
  0xc3   : > { %v765_v5 = vadd.f32 %v725_v32, %v654_v61  ;;  %v382_v21 = vadd.f32 %v362_v25, %v354_v18  ;;  %v395_v52 = vmul.f32 0.015625, %v191_v58 }
  0xc4   : > { %v837_v36 = vadd.f32 %v795_v53, %v766_v38  ;;  %v383_v48 = vadd.f32 %v363_v0, %v355_v40 }
  0xc5   : > { %v836_v37 = vadd.f32 %v796_v57, %v765_v5  ;;  %v414_v23 = vadd.f32 %v394_v31, %v382_v21 }
  0xc6   : > { %v908_v24 = vadd.f32 %v866_v30, %v837_v36  ;;  %v415_v1 = vadd.f32 %v395_v52, %v383_v48 }
  0xc7   : > { %v907_v28 = vadd.f32 %v867_v12, %v836_v37  ;;  %v434_v43 = vmul.f32 0.015625, %v414_v23  ;;  %v454_v13 = vmul.f32 0.09375, %v414_v23  ;;  %v565_v45 = vmul.f32 0.234375, %v414_v23 }
  0xc8   : > { %v999_v14 = vadd.f32 %v957_v16, %v908_v24  ;;  %v435_v7 = vmul.f32 0.015625, %v415_v1  ;;  %v455_v54 = vmul.f32 0.09375, %v415_v1  ;;  %v566_v39 = vmul.f32 0.234375, %v415_v1 }
  0xc9   : > { %v998_v35 = vadd.f32 %v958_v11, %v907_v28  ;;  %v504_v62 = vrot.slane %v454_v13, 1  ;;  %v615_v17 = vrot.slane %v565_v45, 2  ;;  %v676_v63 = vmul.f32 0.3125, %v414_v23 }
  0xca   : > { %1019 = vst [vmem:[%s1566_s25 + $0x88] sm:$0x3] %v999_v14  ;;  %v505_v25 = vrot.slane %v455_v54, 1  ;;  %v616_v49 = vrot.slane %v566_v39, 2  ;;  %v677_v29 = vmul.f32 0.3125, %v415_v1  ;;  %v797_v19 = vrot.slane %v565_v45, 4 }
  0xcb   : > { %1018 = vst [vmem:[%s1566_s25 + $0x80] sm:$0xff] %v998_v35  ;;  %v726_v55 = vrot.slane %v676_v63, 3  ;;  %v798_v46 = vrot.slane %v566_v39, 4  ;;  %v868_v9 = vrot.slane %v454_v13, 5  ;;  %v869_v44 = vrot.slane %v455_v54, 5 }
  0xcc   : > { %v506_v47 = vsel %vm476_vm0, %v504_v62, %v505_v25  ;;  %v546_v51 = vadd.f32 %v505_v25, %v435_v7  ;;  %v617_v15 = vsel %vm587_vm1, %v615_v17, %v616_v49  ;;  %v727_v56 = vrot.slane %v677_v29, 3 }
  0xcd   : > { %v545_v27 = vadd.f32 %v506_v47, %v434_v43  ;;  %v799_v6 = vsel %vm769_vm2, %v797_v19, %v798_v46  ;;  %v870_v50 = vsel %vm840_vm4, %v868_v9, %v869_v44  ;;  %v959_v41 = vrot.slane %v434_v43, 6 }
  0xce   : > { %v728_v20 = vsel %vm698_vm3, %v726_v55, %v727_v56  ;;  %v960_v2 = vrot.slane %v435_v7, 6  ;;  %v657_v10 = vadd.f32 %v616_v49, %v546_v51 }
  0xcf   : > { %v656_v3 = vadd.f32 %v617_v15, %v545_v27 }
  0xd0   : > { %v961_v53 = vsel %vm931_vm5, %v959_v41, %v960_v2  ;;  %v768_v8 = vadd.f32 %v727_v56, %v657_v10 }
  0xd1   : > { %v767_v33 = vadd.f32 %v728_v20, %v656_v3 }
  0xd2   : > { %v839_v26 = vadd.f32 %v798_v46, %v768_v8 }
  0xd3   : > { %v838_v4 = vadd.f32 %v799_v6, %v767_v33 }
  0xd4   : > { %v910_v34 = vadd.f32 %v869_v44, %v839_v26 }
  0xd5   : > { %v909_v57 = vadd.f32 %v870_v50, %v838_v4 }
  0xd6   : > { %v1001_v22 = vadd.f32 %v960_v2, %v910_v34 }
  0xd7   : > { %v1000_v30 = vadd.f32 %v961_v53, %v909_v57 }
  0xd8   : > { %1021 = vst [vmem:[%s1566_s25 + $0x98] sm:$0x3] %v1001_v22 }
  0xd9   : > { %1020 = vst [vmem:[%s1566_s25 + $0x90] sm:$0xff] %v1000_v30 }
  0xda PF: > { %s14_s11 = sadd.s32 1, %s1264_s11   ;;  %s1862_s6 = smov %s1248_s7 }
  0xdb   : > { %p11_p9 = scmp.ge.s32.totalorder %s14_s11, 4   ;;  %s1863_s7 = smov %s1252_s8 }
  0xdc   : > { %s1864_s8 = smov %s1328_s18  ;;  %s1865_s9 = smov %s1260_s10 }
  0xdd   : > { %s1866_s10 = smov %s1868_s13  ;;  %13 = sbr.rel (!%p11_p9) target bundleno = 4 (0x4), region = 64 }
  0xe4   :  { %1049 = vsyncpa [#allocation3], 1 }
  0xe5   :  { %1051 = vsyncpa [#allocation3 + $0x1], 1 }

</bundles_post_ra>
